<compile_context>
chip_gen: v5e
topology: v5e:2x2
jax: 0.10.0
libtpu: 0.0.40
codegen_flags: <defaults>
</compile_context>

<pallas_src>
import jax
import jax.numpy as jnp
from jax import lax
from jax.experimental import pallas as pl
from jax.experimental.pallas import tpu as pltpu


def conv_rel_pos_enc(q, v, size, w_taps, bias, max_window):
    """q, v: (B, L, H*W, C) float32.  Returns q * depthwise_conv(v), shape (B, L, H*W, C).

    w_taps: (K*K, L, W*C)  per-head per-channel taps, pre-broadcast over W (lanes).
    bias:   (L, W*C)       per-channel conv bias, pre-broadcast over W (lanes).
    """
    B, L, N, C = q.shape
    H, W = size
    assert N == H * W
    K = max_window
    P = K // 2
    Hp = H + 2 * P
    WC = W * C
    WPC = (W + 2 * P) * C  # padded lane extent (w-major, c-minor fold)

    # Pure reshapes (contiguous): fold (w, c) onto the lane axis.  No transposes,
    # no HBM-side padding.
    q4 = q.reshape(B, L, H, WC)
    v4 = v.reshape(B, L, H, WC)

    def kernel(q_ref, v_ref, w_ref, b_ref, o_ref, vpad_ref):
        # Zero-initialised padded slab lives in VMEM scratch.  Re-zero every step
        # (cheap, a few KB) so the kernel is safe under megacore "parallel"
        # sharding where each core owns its own scratch.
        vpad_ref[...] = jnp.zeros_like(vpad_ref)
        # Write the unpadded v block into the interior:
        #   rows  [P : P+H]        (sublane axis = H)
        #   lanes [P*C : P*C+W*C]  (lane axis = folded (w, c))
        vpad_ref[:, P:P + H, P * C:P * C + WC] = v_ref[0]

        # Accumulator initialised with the (lane-prebroadcast) bias; broadcast
        # over the H/sublane axis is hoisted out of the tap loop.
        acc = jnp.broadcast_to(b_ref[...][:, None, :], (L, H, WC))

        # Depthwise conv as an unrolled K*K shifted-tap accumulation.
        # dy -> sublane offset in the padded scratch, dx -> lane offset (dx*C);
        # zero-fill at the borders comes for free from the padded scratch.
        for dy in range(K):
            for dx in range(K):
                win = vpad_ref[:, dy:dy + H, dx * C:dx * C + WC]   # (L, H, W*C)
                acc = acc + win * w_ref[dy * K + dx][:, None, :]

        # Fused q * conv_v, full-block lane-dense store.
        o_ref[0] = (q_ref[0] * acc).astype(o_ref.dtype)

    out = pl.pallas_call(
        kernel,
        out_shape=jax.ShapeDtypeStruct((B, L, H, WC), q.dtype),
        grid=(B,),
        in_specs=[
            pl.BlockSpec((1, L, H, WC), lambda b: (b, 0, 0, 0)),   # q
            pl.BlockSpec((1, L, H, WC), lambda b: (b, 0, 0, 0)),   # v (unpadded)
            # Constant index maps: weights/bias DMA'd once, resident across grid.
            pl.BlockSpec((K * K, L, WC), lambda b: (0, 0, 0)),     # taps
            pl.BlockSpec((L, WC), lambda b: (0, 0)),               # bias
        ],
        out_specs=pl.BlockSpec((1, L, H, WC), lambda b: (b, 0, 0, 0)),
        scratch_shapes=[pltpu.VMEM((L, Hp, WPC), jnp.float32)],
        compiler_params=pltpu.CompilerParams(
            dimension_semantics=("parallel",)),
    )(q4, v4, w_taps, bias)
    return out.reshape(B, L, N, C)


def build_params(channels, window, width, key):
    """Deterministic synthetic weights for the ModuleList of depthwise convs.

    Returns:
      w_taps: (K*K, L, W*C)  taps; smaller windows zero-embedded (centered) into
                             Kmax x Kmax, then pre-broadcast over W on the lane axis
      bias:   (L, W*C)       per-channel conv bias, pre-broadcast over W
      per_group: raw per-conv (window, n_ch, weight, bias) for the pure-JAX reference
    """
    C = channels
    W = width
    head_splits = list(window.values())
    L = sum(head_splits)
    K = max(window.keys())

    w_big = jnp.zeros((L * C, K, K), jnp.float32)
    b_big = jnp.zeros((L * C,), jnp.float32)
    per_group = []
    ch_off = 0
    for k, s in window.items():  # dict insertion order == PyTorch ModuleList order
        key, k1, k2 = jax.random.split(key, 3)
        n_ch = s * C
        wg = jax.random.normal(k1, (n_ch, k, k), jnp.float32) * 0.1
        bg = jax.random.normal(k2, (n_ch,), jnp.float32) * 0.1
        off = (K - k) // 2
        w_big = w_big.at[ch_off:ch_off + n_ch, off:off + k, off:off + k].set(wg)
        b_big = b_big.at[ch_off:ch_off + n_ch].set(bg)
        per_group.append((k, n_ch, wg, bg))
        ch_off += n_ch

    # (L*C, K, K) -> (L, C, K, K) -> (K, K, L, C) -> (K*K, L, C)
    w_lc = w_big.reshape(L, C, K, K).transpose(2, 3, 0, 1).reshape(K * K, L, C)
    # Pre-broadcast over W so each tap is already a (L, W*C) lane slab.
    w_taps = jnp.broadcast_to(w_lc[:, :, None, :], (K * K, L, W, C)).reshape(K * K, L, W * C)
    b_lc = b_big.reshape(L, C)
    bias = jnp.broadcast_to(b_lc[:, None, :], (L, W, C)).reshape(L, W * C)
    return w_taps, bias, per_group, L, K


def reference(q, v, size, per_group):
    """Pure-JAX replica of the PyTorch forward (grouped Conv2d per window)."""
    B, L, N, C = q.shape
    H, W = size
    v_nchw = v.reshape(B, L, H, W, C).transpose(0, 1, 4, 2, 3).reshape(B, L * C, H, W)
    outs = []
    ch = 0
    for k, n_ch, wg, bg in per_group:
        x = v_nchw[:, ch:ch + n_ch]
        y = lax.conv_general_dilated(
            x, wg[:, None, :, :], window_strides=(1, 1),
            padding=[(k // 2, k // 2), (k // 2, k // 2)],
            feature_group_count=n_ch,
            dimension_numbers=("NCHW", "OIHW", "NCHW"))
        y = y + bg[None, :, None, None]
        outs.append(y)
        ch += n_ch
    conv_v = jnp.concatenate(outs, axis=1)
    conv_v = conv_v.reshape(B, L, C, H, W).transpose(0, 1, 3, 4, 2).reshape(B, L, N, C)
    return q * conv_v


if __name__ == "__main__":
    channels = 4                # C per head
    window = {3: 1, 5: 2}       # window size -> head split  => L = 3 heads, Kmax = 5
    B, H, W = 2, 8, 8

    w_taps, bias, per_group, L, K = build_params(channels, window, W, jax.random.PRNGKey(0))

    kq, kv = jax.random.split(jax.random.PRNGKey(0))
    q = jax.random.normal(kq, (B, L, H * W, channels), jnp.float32)
    v = jax.random.normal(kv, (B, L, H * W, channels), jnp.float32)

    out = conv_rel_pos_enc(q, v, (H, W), w_taps, bias, K)
    out = jax.block_until_ready(out)

    ref = reference(q, v, (H, W), per_group)
    assert out.shape == (B, L, H * W, channels)
    assert jnp.allclose(out, ref, rtol=1e-5, atol=1e-5), float(jnp.max(jnp.abs(out - ref)))
    print("KERNEL_OK")
</pallas_src>

<mosaic_0001>
module attributes {stable_mosaic.version = 11 : i64} {
  func.func @kernel(%arg0: i32, %arg1: memref<1x3x8x32xf32, #tpu.memory_space<vmem>>, %arg2: memref<1x3x8x32xf32, #tpu.memory_space<vmem>>, %arg3: memref<25x3x32xf32, #tpu.memory_space<vmem>>, %arg4: memref<3x32xf32, #tpu.memory_space<vmem>>, %arg5: memref<1x3x8x32xf32, #tpu.memory_space<vmem>>, %arg6: memref<3x12x48xf32, #tpu.memory_space<vmem>>) attributes {dimension_semantics = [#tpu.dimension_semantics<parallel>], iteration_bounds = array<i64: 2>, scalar_prefetch = 0 : i64, scratch_operands = 1 : i64, tpu.core_type = #tpu.core_type<tc>, window_params = [{transform_indices = @transform_0, window_bounds = array<i64: 1, 3, 8, 32>}, {transform_indices = @transform_1, window_bounds = array<i64: 1, 3, 8, 32>}, {pipeline_mode = #tpu.pipeline_mode<synchronous>, transform_indices = @transform_2, window_bounds = array<i64: 25, 3, 32>}, {pipeline_mode = #tpu.pipeline_mode<synchronous>, transform_indices = @transform_3, window_bounds = array<i64: 3, 32>}, {transform_indices = @transform_4, window_bounds = array<i64: 1, 3, 8, 32>}]} {
    %cst = arith.constant 0.000000e+00 : f32
    %0 = vector.broadcast %cst : f32 to vector<3x12x48xf32>
    %c0 = arith.constant 0 : index
    %c0_0 = arith.constant 0 : index
    %c0_1 = arith.constant 0 : index
    %1 = vector.load %arg6[%c0, %c0_0, %c0_1] : memref<3x12x48xf32, #tpu.memory_space<vmem>>, vector<3x12x48xf32>
    tpu.vector_store %arg6[%c0, %c0_0, %c0_1], %0 {strides = array<i32>} : memref<3x12x48xf32, #tpu.memory_space<vmem>>, vector<3x12x48xf32>,
    %c0_2 = arith.constant 0 : index
    %c0_3 = arith.constant 0 : index
    %c0_4 = arith.constant 0 : index
    %c0_5 = arith.constant 0 : index
    %2 = vector.load %arg2[%c0_2, %c0_3, %c0_4, %c0_5] : memref<1x3x8x32xf32, #tpu.memory_space<vmem>>, vector<1x3x8x32xf32>
    %3 = vector.shape_cast %2 : vector<1x3x8x32xf32> to vector<3x8x32xf32>
    %c0_6 = arith.constant 0 : index
    %c2 = arith.constant 2 : index
    %c8 = arith.constant 8 : index
    %4 = vector.load %arg6[%c0_6, %c2, %c8] : memref<3x12x48xf32, #tpu.memory_space<vmem>>, vector<3x8x32xf32>
    tpu.vector_store %arg6[%c0_6, %c2, %c8], %3 {strides = array<i32>} : memref<3x12x48xf32, #tpu.memory_space<vmem>>, vector<3x8x32xf32>,
    %c0_7 = arith.constant 0 : index
    %c0_8 = arith.constant 0 : index
    %5 = vector.load %arg4[%c0_7, %c0_8] : memref<3x32xf32, #tpu.memory_space<vmem>>, vector<3x32xf32>
    %6 = vector.shape_cast %5 : vector<3x32xf32> to vector<3x1x32xf32>
    %7 = vector.shape_cast %6 : vector<3x1x32xf32> to vector<3x1x32xf32>
    %8 = vector.broadcast %7 : vector<3x1x32xf32> to vector<3x8x32xf32>
    %c0_9 = arith.constant 0 : index
    %c0_10 = arith.constant 0 : index
    %c0_11 = arith.constant 0 : index
    %9 = vector.load %arg6[%c0_9, %c0_10, %c0_11] : memref<3x12x48xf32, #tpu.memory_space<vmem>>, vector<3x8x32xf32>
    %c0_12 = arith.constant 0 : index
    %c0_13 = arith.constant 0 : index
    %c0_14 = arith.constant 0 : index
    %10 = vector.load %arg3[%c0_12, %c0_13, %c0_14] : memref<25x3x32xf32, #tpu.memory_space<vmem>>, vector<1x3x32xf32>
    %11 = vector.shape_cast %10 : vector<1x3x32xf32> to vector<3x32xf32>
    %12 = vector.shape_cast %11 : vector<3x32xf32> to vector<3x1x32xf32>
    %13 = vector.broadcast %12 : vector<3x1x32xf32> to vector<3x8x32xf32>
    %14 = arith.mulf %9, %13 : vector<3x8x32xf32>
    %15 = arith.addf %8, %14 : vector<3x8x32xf32>
    %c0_15 = arith.constant 0 : index
    %c0_16 = arith.constant 0 : index
    %c4 = arith.constant 4 : index
    %16 = vector.load %arg6[%c0_15, %c0_16, %c4] : memref<3x12x48xf32, #tpu.memory_space<vmem>>, vector<3x8x32xf32>
    %c1 = arith.constant 1 : index
    %c0_17 = arith.constant 0 : index
    %c0_18 = arith.constant 0 : index
    %17 = vector.load %arg3[%c1, %c0_17, %c0_18] : memref<25x3x32xf32, #tpu.memory_space<vmem>>, vector<1x3x32xf32>
    %18 = vector.shape_cast %17 : vector<1x3x32xf32> to vector<3x32xf32>
    %19 = vector.shape_cast %18 : vector<3x32xf32> to vector<3x1x32xf32>
    %20 = vector.broadcast %19 : vector<3x1x32xf32> to vector<3x8x32xf32>
    %21 = arith.mulf %16, %20 : vector<3x8x32xf32>
    %22 = arith.addf %15, %21 : vector<3x8x32xf32>
    %c0_19 = arith.constant 0 : index
    %c0_20 = arith.constant 0 : index
    %c8_21 = arith.constant 8 : index
    %23 = vector.load %arg6[%c0_19, %c0_20, %c8_21] : memref<3x12x48xf32, #tpu.memory_space<vmem>>, vector<3x8x32xf32>
    %c2_22 = arith.constant 2 : index
    %c0_23 = arith.constant 0 : index
    %c0_24 = arith.constant 0 : index
    %24 = vector.load %arg3[%c2_22, %c0_23, %c0_24] : memref<25x3x32xf32, #tpu.memory_space<vmem>>, vector<1x3x32xf32>
    %25 = vector.shape_cast %24 : vector<1x3x32xf32> to vector<3x32xf32>
    %26 = vector.shape_cast %25 : vector<3x32xf32> to vector<3x1x32xf32>
    %27 = vector.broadcast %26 : vector<3x1x32xf32> to vector<3x8x32xf32>
    %28 = arith.mulf %23, %27 : vector<3x8x32xf32>
    %29 = arith.addf %22, %28 : vector<3x8x32xf32>
    %c0_25 = arith.constant 0 : index
    %c0_26 = arith.constant 0 : index
    %c12 = arith.constant 12 : index
    %30 = vector.load %arg6[%c0_25, %c0_26, %c12] : memref<3x12x48xf32, #tpu.memory_space<vmem>>, vector<3x8x32xf32>
    %c3 = arith.constant 3 : index
    %c0_27 = arith.constant 0 : index
    %c0_28 = arith.constant 0 : index
    %31 = vector.load %arg3[%c3, %c0_27, %c0_28] : memref<25x3x32xf32, #tpu.memory_space<vmem>>, vector<1x3x32xf32>
    %32 = vector.shape_cast %31 : vector<1x3x32xf32> to vector<3x32xf32>
    %33 = vector.shape_cast %32 : vector<3x32xf32> to vector<3x1x32xf32>
    %34 = vector.broadcast %33 : vector<3x1x32xf32> to vector<3x8x32xf32>
    %35 = arith.mulf %30, %34 : vector<3x8x32xf32>
    %36 = arith.addf %29, %35 : vector<3x8x32xf32>
    %c0_29 = arith.constant 0 : index
    %c0_30 = arith.constant 0 : index
    %c16 = arith.constant 16 : index
    %37 = vector.load %arg6[%c0_29, %c0_30, %c16] : memref<3x12x48xf32, #tpu.memory_space<vmem>>, vector<3x8x32xf32>
    %c4_31 = arith.constant 4 : index
    %c0_32 = arith.constant 0 : index
    %c0_33 = arith.constant 0 : index
    %38 = vector.load %arg3[%c4_31, %c0_32, %c0_33] : memref<25x3x32xf32, #tpu.memory_space<vmem>>, vector<1x3x32xf32>
    %39 = vector.shape_cast %38 : vector<1x3x32xf32> to vector<3x32xf32>
    %40 = vector.shape_cast %39 : vector<3x32xf32> to vector<3x1x32xf32>
    %41 = vector.broadcast %40 : vector<3x1x32xf32> to vector<3x8x32xf32>
    %42 = arith.mulf %37, %41 : vector<3x8x32xf32>
    %43 = arith.addf %36, %42 : vector<3x8x32xf32>
    %c0_34 = arith.constant 0 : index
    %c1_35 = arith.constant 1 : index
    %c0_36 = arith.constant 0 : index
    %44 = vector.load %arg6[%c0_34, %c1_35, %c0_36] : memref<3x12x48xf32, #tpu.memory_space<vmem>>, vector<3x8x32xf32>
    %c5 = arith.constant 5 : index
    %c0_37 = arith.constant 0 : index
    %c0_38 = arith.constant 0 : index
    %45 = vector.load %arg3[%c5, %c0_37, %c0_38] : memref<25x3x32xf32, #tpu.memory_space<vmem>>, vector<1x3x32xf32>
    %46 = vector.shape_cast %45 : vector<1x3x32xf32> to vector<3x32xf32>
    %47 = vector.shape_cast %46 : vector<3x32xf32> to vector<3x1x32xf32>
    %48 = vector.broadcast %47 : vector<3x1x32xf32> to vector<3x8x32xf32>
    %49 = arith.mulf %44, %48 : vector<3x8x32xf32>
    %50 = arith.addf %43, %49 : vector<3x8x32xf32>
    %c0_39 = arith.constant 0 : index
    %c1_40 = arith.constant 1 : index
    %c4_41 = arith.constant 4 : index
    %51 = vector.load %arg6[%c0_39, %c1_40, %c4_41] : memref<3x12x48xf32, #tpu.memory_space<vmem>>, vector<3x8x32xf32>
    %c6 = arith.constant 6 : index
    %c0_42 = arith.constant 0 : index
    %c0_43 = arith.constant 0 : index
    %52 = vector.load %arg3[%c6, %c0_42, %c0_43] : memref<25x3x32xf32, #tpu.memory_space<vmem>>, vector<1x3x32xf32>
    %53 = vector.shape_cast %52 : vector<1x3x32xf32> to vector<3x32xf32>
    %54 = vector.shape_cast %53 : vector<3x32xf32> to vector<3x1x32xf32>
    %55 = vector.broadcast %54 : vector<3x1x32xf32> to vector<3x8x32xf32>
    %56 = arith.mulf %51, %55 : vector<3x8x32xf32>
    %57 = arith.addf %50, %56 : vector<3x8x32xf32>
    %c0_44 = arith.constant 0 : index
    %c1_45 = arith.constant 1 : index
    %c8_46 = arith.constant 8 : index
    %58 = vector.load %arg6[%c0_44, %c1_45, %c8_46] : memref<3x12x48xf32, #tpu.memory_space<vmem>>, vector<3x8x32xf32>
    %c7 = arith.constant 7 : index
    %c0_47 = arith.constant 0 : index
    %c0_48 = arith.constant 0 : index
    %59 = vector.load %arg3[%c7, %c0_47, %c0_48] : memref<25x3x32xf32, #tpu.memory_space<vmem>>, vector<1x3x32xf32>
    %60 = vector.shape_cast %59 : vector<1x3x32xf32> to vector<3x32xf32>
    %61 = vector.shape_cast %60 : vector<3x32xf32> to vector<3x1x32xf32>
    %62 = vector.broadcast %61 : vector<3x1x32xf32> to vector<3x8x32xf32>
    %63 = arith.mulf %58, %62 : vector<3x8x32xf32>
    %64 = arith.addf %57, %63 : vector<3x8x32xf32>
    %c0_49 = arith.constant 0 : index
    %c1_50 = arith.constant 1 : index
    %c12_51 = arith.constant 12 : index
    %65 = vector.load %arg6[%c0_49, %c1_50, %c12_51] : memref<3x12x48xf32, #tpu.memory_space<vmem>>, vector<3x8x32xf32>
    %c8_52 = arith.constant 8 : index
    %c0_53 = arith.constant 0 : index
    %c0_54 = arith.constant 0 : index
    %66 = vector.load %arg3[%c8_52, %c0_53, %c0_54] : memref<25x3x32xf32, #tpu.memory_space<vmem>>, vector<1x3x32xf32>
    %67 = vector.shape_cast %66 : vector<1x3x32xf32> to vector<3x32xf32>
    %68 = vector.shape_cast %67 : vector<3x32xf32> to vector<3x1x32xf32>
    %69 = vector.broadcast %68 : vector<3x1x32xf32> to vector<3x8x32xf32>
    %70 = arith.mulf %65, %69 : vector<3x8x32xf32>
    %71 = arith.addf %64, %70 : vector<3x8x32xf32>
    %c0_55 = arith.constant 0 : index
    %c1_56 = arith.constant 1 : index
    %c16_57 = arith.constant 16 : index
    %72 = vector.load %arg6[%c0_55, %c1_56, %c16_57] : memref<3x12x48xf32, #tpu.memory_space<vmem>>, vector<3x8x32xf32>
    %c9 = arith.constant 9 : index
    %c0_58 = arith.constant 0 : index
    %c0_59 = arith.constant 0 : index
    %73 = vector.load %arg3[%c9, %c0_58, %c0_59] : memref<25x3x32xf32, #tpu.memory_space<vmem>>, vector<1x3x32xf32>
    %74 = vector.shape_cast %73 : vector<1x3x32xf32> to vector<3x32xf32>
    %75 = vector.shape_cast %74 : vector<3x32xf32> to vector<3x1x32xf32>
    %76 = vector.broadcast %75 : vector<3x1x32xf32> to vector<3x8x32xf32>
    %77 = arith.mulf %72, %76 : vector<3x8x32xf32>
    %78 = arith.addf %71, %77 : vector<3x8x32xf32>
    %c0_60 = arith.constant 0 : index
    %c2_61 = arith.constant 2 : index
    %c0_62 = arith.constant 0 : index
    %79 = vector.load %arg6[%c0_60, %c2_61, %c0_62] : memref<3x12x48xf32, #tpu.memory_space<vmem>>, vector<3x8x32xf32>
    %c10 = arith.constant 10 : index
    %c0_63 = arith.constant 0 : index
    %c0_64 = arith.constant 0 : index
    %80 = vector.load %arg3[%c10, %c0_63, %c0_64] : memref<25x3x32xf32, #tpu.memory_space<vmem>>, vector<1x3x32xf32>
    %81 = vector.shape_cast %80 : vector<1x3x32xf32> to vector<3x32xf32>
    %82 = vector.shape_cast %81 : vector<3x32xf32> to vector<3x1x32xf32>
    %83 = vector.broadcast %82 : vector<3x1x32xf32> to vector<3x8x32xf32>
    %84 = arith.mulf %79, %83 : vector<3x8x32xf32>
    %85 = arith.addf %78, %84 : vector<3x8x32xf32>
    %c0_65 = arith.constant 0 : index
    %c2_66 = arith.constant 2 : index
    %c4_67 = arith.constant 4 : index
    %86 = vector.load %arg6[%c0_65, %c2_66, %c4_67] : memref<3x12x48xf32, #tpu.memory_space<vmem>>, vector<3x8x32xf32>
    %c11 = arith.constant 11 : index
    %c0_68 = arith.constant 0 : index
    %c0_69 = arith.constant 0 : index
    %87 = vector.load %arg3[%c11, %c0_68, %c0_69] : memref<25x3x32xf32, #tpu.memory_space<vmem>>, vector<1x3x32xf32>
    %88 = vector.shape_cast %87 : vector<1x3x32xf32> to vector<3x32xf32>
    %89 = vector.shape_cast %88 : vector<3x32xf32> to vector<3x1x32xf32>
    %90 = vector.broadcast %89 : vector<3x1x32xf32> to vector<3x8x32xf32>
    %91 = arith.mulf %86, %90 : vector<3x8x32xf32>
    %92 = arith.addf %85, %91 : vector<3x8x32xf32>
    %c0_70 = arith.constant 0 : index
    %c2_71 = arith.constant 2 : index
    %c8_72 = arith.constant 8 : index
    %93 = vector.load %arg6[%c0_70, %c2_71, %c8_72] : memref<3x12x48xf32, #tpu.memory_space<vmem>>, vector<3x8x32xf32>
    %c12_73 = arith.constant 12 : index
    %c0_74 = arith.constant 0 : index
    %c0_75 = arith.constant 0 : index
    %94 = vector.load %arg3[%c12_73, %c0_74, %c0_75] : memref<25x3x32xf32, #tpu.memory_space<vmem>>, vector<1x3x32xf32>
    %95 = vector.shape_cast %94 : vector<1x3x32xf32> to vector<3x32xf32>
    %96 = vector.shape_cast %95 : vector<3x32xf32> to vector<3x1x32xf32>
    %97 = vector.broadcast %96 : vector<3x1x32xf32> to vector<3x8x32xf32>
    %98 = arith.mulf %93, %97 : vector<3x8x32xf32>
    %99 = arith.addf %92, %98 : vector<3x8x32xf32>
    %c0_76 = arith.constant 0 : index
    %c2_77 = arith.constant 2 : index
    %c12_78 = arith.constant 12 : index
    %100 = vector.load %arg6[%c0_76, %c2_77, %c12_78] : memref<3x12x48xf32, #tpu.memory_space<vmem>>, vector<3x8x32xf32>
    %c13 = arith.constant 13 : index
    %c0_79 = arith.constant 0 : index
    %c0_80 = arith.constant 0 : index
    %101 = vector.load %arg3[%c13, %c0_79, %c0_80] : memref<25x3x32xf32, #tpu.memory_space<vmem>>, vector<1x3x32xf32>
    %102 = vector.shape_cast %101 : vector<1x3x32xf32> to vector<3x32xf32>
    %103 = vector.shape_cast %102 : vector<3x32xf32> to vector<3x1x32xf32>
    %104 = vector.broadcast %103 : vector<3x1x32xf32> to vector<3x8x32xf32>
    %105 = arith.mulf %100, %104 : vector<3x8x32xf32>
    %106 = arith.addf %99, %105 : vector<3x8x32xf32>
    %c0_81 = arith.constant 0 : index
    %c2_82 = arith.constant 2 : index
    %c16_83 = arith.constant 16 : index
    %107 = vector.load %arg6[%c0_81, %c2_82, %c16_83] : memref<3x12x48xf32, #tpu.memory_space<vmem>>, vector<3x8x32xf32>
    %c14 = arith.constant 14 : index
    %c0_84 = arith.constant 0 : index
    %c0_85 = arith.constant 0 : index
    %108 = vector.load %arg3[%c14, %c0_84, %c0_85] : memref<25x3x32xf32, #tpu.memory_space<vmem>>, vector<1x3x32xf32>
    %109 = vector.shape_cast %108 : vector<1x3x32xf32> to vector<3x32xf32>
    %110 = vector.shape_cast %109 : vector<3x32xf32> to vector<3x1x32xf32>
    %111 = vector.broadcast %110 : vector<3x1x32xf32> to vector<3x8x32xf32>
    %112 = arith.mulf %107, %111 : vector<3x8x32xf32>
    %113 = arith.addf %106, %112 : vector<3x8x32xf32>
    %c0_86 = arith.constant 0 : index
    %c3_87 = arith.constant 3 : index
    %c0_88 = arith.constant 0 : index
    %114 = vector.load %arg6[%c0_86, %c3_87, %c0_88] : memref<3x12x48xf32, #tpu.memory_space<vmem>>, vector<3x8x32xf32>
    %c15 = arith.constant 15 : index
    %c0_89 = arith.constant 0 : index
    %c0_90 = arith.constant 0 : index
    %115 = vector.load %arg3[%c15, %c0_89, %c0_90] : memref<25x3x32xf32, #tpu.memory_space<vmem>>, vector<1x3x32xf32>
    %116 = vector.shape_cast %115 : vector<1x3x32xf32> to vector<3x32xf32>
    %117 = vector.shape_cast %116 : vector<3x32xf32> to vector<3x1x32xf32>
    %118 = vector.broadcast %117 : vector<3x1x32xf32> to vector<3x8x32xf32>
    %119 = arith.mulf %114, %118 : vector<3x8x32xf32>
    %120 = arith.addf %113, %119 : vector<3x8x32xf32>
    %c0_91 = arith.constant 0 : index
    %c3_92 = arith.constant 3 : index
    %c4_93 = arith.constant 4 : index
    %121 = vector.load %arg6[%c0_91, %c3_92, %c4_93] : memref<3x12x48xf32, #tpu.memory_space<vmem>>, vector<3x8x32xf32>
    %c16_94 = arith.constant 16 : index
    %c0_95 = arith.constant 0 : index
    %c0_96 = arith.constant 0 : index
    %122 = vector.load %arg3[%c16_94, %c0_95, %c0_96] : memref<25x3x32xf32, #tpu.memory_space<vmem>>, vector<1x3x32xf32>
    %123 = vector.shape_cast %122 : vector<1x3x32xf32> to vector<3x32xf32>
    %124 = vector.shape_cast %123 : vector<3x32xf32> to vector<3x1x32xf32>
    %125 = vector.broadcast %124 : vector<3x1x32xf32> to vector<3x8x32xf32>
    %126 = arith.mulf %121, %125 : vector<3x8x32xf32>
    %127 = arith.addf %120, %126 : vector<3x8x32xf32>
    %c0_97 = arith.constant 0 : index
    %c3_98 = arith.constant 3 : index
    %c8_99 = arith.constant 8 : index
    %128 = vector.load %arg6[%c0_97, %c3_98, %c8_99] : memref<3x12x48xf32, #tpu.memory_space<vmem>>, vector<3x8x32xf32>
    %c17 = arith.constant 17 : index
    %c0_100 = arith.constant 0 : index
    %c0_101 = arith.constant 0 : index
    %129 = vector.load %arg3[%c17, %c0_100, %c0_101] : memref<25x3x32xf32, #tpu.memory_space<vmem>>, vector<1x3x32xf32>
    %130 = vector.shape_cast %129 : vector<1x3x32xf32> to vector<3x32xf32>
    %131 = vector.shape_cast %130 : vector<3x32xf32> to vector<3x1x32xf32>
    %132 = vector.broadcast %131 : vector<3x1x32xf32> to vector<3x8x32xf32>
    %133 = arith.mulf %128, %132 : vector<3x8x32xf32>
    %134 = arith.addf %127, %133 : vector<3x8x32xf32>
    %c0_102 = arith.constant 0 : index
    %c3_103 = arith.constant 3 : index
    %c12_104 = arith.constant 12 : index
    %135 = vector.load %arg6[%c0_102, %c3_103, %c12_104] : memref<3x12x48xf32, #tpu.memory_space<vmem>>, vector<3x8x32xf32>
    %c18 = arith.constant 18 : index
    %c0_105 = arith.constant 0 : index
    %c0_106 = arith.constant 0 : index
    %136 = vector.load %arg3[%c18, %c0_105, %c0_106] : memref<25x3x32xf32, #tpu.memory_space<vmem>>, vector<1x3x32xf32>
    %137 = vector.shape_cast %136 : vector<1x3x32xf32> to vector<3x32xf32>
    %138 = vector.shape_cast %137 : vector<3x32xf32> to vector<3x1x32xf32>
    %139 = vector.broadcast %138 : vector<3x1x32xf32> to vector<3x8x32xf32>
    %140 = arith.mulf %135, %139 : vector<3x8x32xf32>
    %141 = arith.addf %134, %140 : vector<3x8x32xf32>
    %c0_107 = arith.constant 0 : index
    %c3_108 = arith.constant 3 : index
    %c16_109 = arith.constant 16 : index
    %142 = vector.load %arg6[%c0_107, %c3_108, %c16_109] : memref<3x12x48xf32, #tpu.memory_space<vmem>>, vector<3x8x32xf32>
    %c19 = arith.constant 19 : index
    %c0_110 = arith.constant 0 : index
    %c0_111 = arith.constant 0 : index
    %143 = vector.load %arg3[%c19, %c0_110, %c0_111] : memref<25x3x32xf32, #tpu.memory_space<vmem>>, vector<1x3x32xf32>
    %144 = vector.shape_cast %143 : vector<1x3x32xf32> to vector<3x32xf32>
    %145 = vector.shape_cast %144 : vector<3x32xf32> to vector<3x1x32xf32>
    %146 = vector.broadcast %145 : vector<3x1x32xf32> to vector<3x8x32xf32>
    %147 = arith.mulf %142, %146 : vector<3x8x32xf32>
    %148 = arith.addf %141, %147 : vector<3x8x32xf32>
    %c0_112 = arith.constant 0 : index
    %c4_113 = arith.constant 4 : index
    %c0_114 = arith.constant 0 : index
    %149 = vector.load %arg6[%c0_112, %c4_113, %c0_114] : memref<3x12x48xf32, #tpu.memory_space<vmem>>, vector<3x8x32xf32>
    %c20 = arith.constant 20 : index
    %c0_115 = arith.constant 0 : index
    %c0_116 = arith.constant 0 : index
    %150 = vector.load %arg3[%c20, %c0_115, %c0_116] : memref<25x3x32xf32, #tpu.memory_space<vmem>>, vector<1x3x32xf32>
    %151 = vector.shape_cast %150 : vector<1x3x32xf32> to vector<3x32xf32>
    %152 = vector.shape_cast %151 : vector<3x32xf32> to vector<3x1x32xf32>
    %153 = vector.broadcast %152 : vector<3x1x32xf32> to vector<3x8x32xf32>
    %154 = arith.mulf %149, %153 : vector<3x8x32xf32>
    %155 = arith.addf %148, %154 : vector<3x8x32xf32>
    %c0_117 = arith.constant 0 : index
    %c4_118 = arith.constant 4 : index
    %c4_119 = arith.constant 4 : index
    %156 = vector.load %arg6[%c0_117, %c4_118, %c4_119] : memref<3x12x48xf32, #tpu.memory_space<vmem>>, vector<3x8x32xf32>
    %c21 = arith.constant 21 : index
    %c0_120 = arith.constant 0 : index
    %c0_121 = arith.constant 0 : index
    %157 = vector.load %arg3[%c21, %c0_120, %c0_121] : memref<25x3x32xf32, #tpu.memory_space<vmem>>, vector<1x3x32xf32>
    %158 = vector.shape_cast %157 : vector<1x3x32xf32> to vector<3x32xf32>
    %159 = vector.shape_cast %158 : vector<3x32xf32> to vector<3x1x32xf32>
    %160 = vector.broadcast %159 : vector<3x1x32xf32> to vector<3x8x32xf32>
    %161 = arith.mulf %156, %160 : vector<3x8x32xf32>
    %162 = arith.addf %155, %161 : vector<3x8x32xf32>
    %c0_122 = arith.constant 0 : index
    %c4_123 = arith.constant 4 : index
    %c8_124 = arith.constant 8 : index
    %163 = vector.load %arg6[%c0_122, %c4_123, %c8_124] : memref<3x12x48xf32, #tpu.memory_space<vmem>>, vector<3x8x32xf32>
    %c22 = arith.constant 22 : index
    %c0_125 = arith.constant 0 : index
    %c0_126 = arith.constant 0 : index
    %164 = vector.load %arg3[%c22, %c0_125, %c0_126] : memref<25x3x32xf32, #tpu.memory_space<vmem>>, vector<1x3x32xf32>
    %165 = vector.shape_cast %164 : vector<1x3x32xf32> to vector<3x32xf32>
    %166 = vector.shape_cast %165 : vector<3x32xf32> to vector<3x1x32xf32>
    %167 = vector.broadcast %166 : vector<3x1x32xf32> to vector<3x8x32xf32>
    %168 = arith.mulf %163, %167 : vector<3x8x32xf32>
    %169 = arith.addf %162, %168 : vector<3x8x32xf32>
    %c0_127 = arith.constant 0 : index
    %c4_128 = arith.constant 4 : index
    %c12_129 = arith.constant 12 : index
    %170 = vector.load %arg6[%c0_127, %c4_128, %c12_129] : memref<3x12x48xf32, #tpu.memory_space<vmem>>, vector<3x8x32xf32>
    %c23 = arith.constant 23 : index
    %c0_130 = arith.constant 0 : index
    %c0_131 = arith.constant 0 : index
    %171 = vector.load %arg3[%c23, %c0_130, %c0_131] : memref<25x3x32xf32, #tpu.memory_space<vmem>>, vector<1x3x32xf32>
    %172 = vector.shape_cast %171 : vector<1x3x32xf32> to vector<3x32xf32>
    %173 = vector.shape_cast %172 : vector<3x32xf32> to vector<3x1x32xf32>
    %174 = vector.broadcast %173 : vector<3x1x32xf32> to vector<3x8x32xf32>
    %175 = arith.mulf %170, %174 : vector<3x8x32xf32>
    %176 = arith.addf %169, %175 : vector<3x8x32xf32>
    %c0_132 = arith.constant 0 : index
    %c4_133 = arith.constant 4 : index
    %c16_134 = arith.constant 16 : index
    %177 = vector.load %arg6[%c0_132, %c4_133, %c16_134] : memref<3x12x48xf32, #tpu.memory_space<vmem>>, vector<3x8x32xf32>
    %c24 = arith.constant 24 : index
    %c0_135 = arith.constant 0 : index
    %c0_136 = arith.constant 0 : index
    %178 = vector.load %arg3[%c24, %c0_135, %c0_136] : memref<25x3x32xf32, #tpu.memory_space<vmem>>, vector<1x3x32xf32>
    %179 = vector.shape_cast %178 : vector<1x3x32xf32> to vector<3x32xf32>
    %180 = vector.shape_cast %179 : vector<3x32xf32> to vector<3x1x32xf32>
    %181 = vector.broadcast %180 : vector<3x1x32xf32> to vector<3x8x32xf32>
    %182 = arith.mulf %177, %181 : vector<3x8x32xf32>
    %183 = arith.addf %176, %182 : vector<3x8x32xf32>
    %c0_137 = arith.constant 0 : index
    %c0_138 = arith.constant 0 : index
    %c0_139 = arith.constant 0 : index
    %c0_140 = arith.constant 0 : index
    %184 = vector.load %arg1[%c0_137, %c0_138, %c0_139, %c0_140] : memref<1x3x8x32xf32, #tpu.memory_space<vmem>>, vector<1x3x8x32xf32>
    %185 = vector.shape_cast %184 : vector<1x3x8x32xf32> to vector<3x8x32xf32>
    %186 = arith.mulf %185, %183 : vector<3x8x32xf32>
    %c0_141 = arith.constant 0 : index
    %c0_142 = arith.constant 0 : index
    %c0_143 = arith.constant 0 : index
    %c0_144 = arith.constant 0 : index
    %187 = vector.load %arg5[%c0_141, %c0_142, %c0_143, %c0_144] : memref<1x3x8x32xf32, #tpu.memory_space<vmem>>, vector<1x3x8x32xf32>
    %188 = vector.shape_cast %187 : vector<1x3x8x32xf32> to vector<3x8x32xf32>
    %189 = vector.shape_cast %186 : vector<3x8x32xf32> to vector<1x3x8x32xf32>
    tpu.vector_store %arg5[%c0_141, %c0_142, %c0_143, %c0_144], %189 {strides = array<i32>} : memref<1x3x8x32xf32, #tpu.memory_space<vmem>>, vector<1x3x8x32xf32>,
    return
  }
  func.func @transform_0(%arg0: i32) -> (i32, i32, i32, i32) {
    %c0_i32 = arith.constant 0 : i32
    %c0_i32_0 = arith.constant 0 : i32
    %c0_i32_1 = arith.constant 0 : i32
    %c0_i32_2 = arith.constant 0 : i32
    return %arg0, %c0_i32, %c0_i32_0, %c0_i32_1 : i32, i32, i32, i32
  }
  func.func @transform_1(%arg0: i32) -> (i32, i32, i32, i32) {
    %c0_i32 = arith.constant 0 : i32
    %c0_i32_0 = arith.constant 0 : i32
    %c0_i32_1 = arith.constant 0 : i32
    %c0_i32_2 = arith.constant 0 : i32
    return %arg0, %c0_i32, %c0_i32_0, %c0_i32_1 : i32, i32, i32, i32
  }
  func.func @transform_2(%arg0: i32) -> (i32, i32, i32) {
    %c0_i32 = arith.constant 0 : i32
    %c0_i32_0 = arith.constant 0 : i32
    %c0_i32_1 = arith.constant 0 : i32
    %c0_i32_2 = arith.constant 0 : i32
    return %c0_i32, %c0_i32_0, %c0_i32_1 : i32, i32, i32
  }
  func.func @transform_3(%arg0: i32) -> (i32, i32) {
    %c0_i32 = arith.constant 0 : i32
    %c0_i32_0 = arith.constant 0 : i32
    %c0_i32_1 = arith.constant 0 : i32
    return %c0_i32, %c0_i32_0 : i32, i32
  }
  func.func @transform_4(%arg0: i32) -> (i32, i32, i32, i32) {
    %c0_i32 = arith.constant 0 : i32
    %c0_i32_0 = arith.constant 0 : i32
    %c0_i32_1 = arith.constant 0 : i32
    %c0_i32_2 = arith.constant 0 : i32
    return %arg0, %c0_i32, %c0_i32_0, %c0_i32_1 : i32, i32, i32, i32
  }
}

</mosaic_0001>

<bundles_post_ra>
// kernel: tpu_custom_call.1
= control target key start
LH: loop header
LB: loop body
LE: loop exit
PB: predicated region body
PF: predicated region fallthrough
CT: control target
= control target key end

     0   :  { %9 = vsyncpa [#allocation4], 0  ;;  %s1780_s0 = inlined_call_operand.vmem [shape: f32[2,3,8,32], index: 0, kind: input, shape index: {}]   ;;  %s1781_s1 = inlined_call_operand.vmem [shape: f32[2,3,8,32], index: 1, kind: input, shape index: {}]   ;;  %s1782_s2 = inlined_call_operand.vmem [shape: f32[25,3,32], index: 2, kind: input, shape index: {}]   ;;  %s1783_s3 = inlined_call_operand.vmem [shape: f32[3,32], index: 3, kind: input, shape index: {}]   ;;  %s1784_s4 = inlined_call_operand.hbm [shape: f32[2,3,8,32], index: 4, kind: output, shape index: {}]  }
   0x1   :  { %11 = vsyncpa [#allocation4 + $0x1], 0  ;;  %s1336_s15 = smov 0   ;;  %s1338_s16 = smov 0  }
   0x2   :  { %s1340_s17 = smov 0   ;;  %s1342_s18 = smov 0  }
   0x3 LB: > { %s1357_s19 = sadd.s32 4294967295, %s1299_s18   ;;  %s1152_s20 = sadd.s32 4294967294, %s1299_s18   ;;  %s1299_s18 = sphi %s1342_s18, %s1790_s18   ;;  %s1295_s17 = sphi %s1340_s17, %s1789_s17   ;;  %s1291_s16 = sphi %s1338_s16, %s1788_s16   ;;  %s1287_s15 = sphi %s1336_s15, %s1787_s15  }
   0x4   : > { %s1361_s21 = sadd.s32 1, %s1299_s18   ;;  %s118_s22 = sadd.s32 1, %s1295_s17 }
   0x5   : > { %s115_s23 = ssub.s32 %s1299_s18, %s1361_s21  ;;  %p128_p0 = scmp.ne.s32.totalorder %s1295_s17, %s1291_s16 }
   0x6   : > { %p116_p1 = scmp.eq.s32.totalorder %s115_s23, 0  ;;  %p129_p2 = scmp.eq.s32.totalorder %s1357_s19, 1 }
   0x7   : > { %p134_p3 = scmp.ne.s32.totalorder %s1291_s16, %s1287_s15  ;;  %p135_p4 = scmp.eq.s32.totalorder %s1152_s20, 1 }
   0x8   : > { %s1372_s24 = scalar_select %p116_p1, %s1295_s17, %s118_s22  }
   0x9   : > { %p1374_p5 = por %p129_p2, %p128_p0  ;;  %p1378_p6 = por %p135_p4, %p134_p3 }
   0xa   : > { %p1155_p7 = scmp.ge.s32.totalorder %s1299_s18, 1  ;;  %p175_p8 = scmp.lt.s32.totalorder %s1299_s18, 3 }
   0xc   : > { %p176_p9 = pnand %p1155_p7, %p175_p8 }
   0xd   : > { %p206_p10 = scmp.lt.s32.totalorder (!%p176_p9), %s1357_s19, 1  ;;  %s1301_s30 = smov (!%p176_p9), 4  }
   0xe   : > { %179 = sbr.rel (%p176_p9) target bundleno = 1361 (0x551), region = 36  ;;  %s1302_s9 = smov (!%p176_p9), 8  }
   0xf   : > { %s1303_s22 = smov (!%p176_p9), 12   ;;  %s1304_s28 = smov (!%p176_p9), 16  }
  0x10   : > { %s1306_s7 = smov (!%p176_p9), 124   ;;  %s1308_s10 = smov (!%p176_p9), 116  }
  0x11   : > { %s1309_s11 = smov (!%p176_p9), 112  }
  0x13   : > { %v1158_v0 = vld [vmem:[%s1782_s2 + $0x4] sm:$0x7]  ;;  %s1389_s29 = scalar_select %p206_p10, %s1357_s19, 1  ;;  %v1159_v7 = vld [vmem:[%s1782_s2 + $0x8] sm:$0x7]  ;;  %vm216_vm0 = vcmask 392192  }
  0x14   : > { %v277_v1 = vperm.slane %v1158_v0, 0  ;;  %v275_v2 = vrot.slane %v1158_v0, 1  ;;  %v276_v4 = vrot.slane %v1158_v0, 2  ;;  %v310_v9 = vrot.slane %v1159_v7, 1  ;;  %v1160_v13 = vld [vmem:[%s1782_s2 + $0xc] sm:$0x7] }
  0x15   : > { %s1186_s5 = smul.u32 24, %s1389_s29  ;;  %v311_v11 = vrot.slane %v1159_v7, 2  ;;  %v345_v15 = vrot.slane %v1160_v13, 1  ;;  %v312_v16 = vperm.slane %v1159_v7, 0  ;;  %v346_v17 = vrot.slane %v1160_v13, 2 }
  0x16   : > { %280 = vrot.lane.b32.xlu1 %v277_v1, %s1301_s30  ;;  %v278_v3 = vperm.slane %v275_v2, 0  ;;  %v279_v8 = vperm.slane %v276_v4, 0  ;;  %v313_v12 = vperm.slane %v310_v9, 0  ;;  %v1161_v19 = vld [vmem:[%s1782_s2 + $0x10] sm:$0x7]  ;;  %v347_v22 = vperm.slane %v1160_v13, 0 }
  0x17   : > { %s215_s8 = scalar_lea.vmem %s1781_s1, %s1186_s5  ;;  %v314_v14 = vperm.slane %v311_v11, 0  ;;  %v348_v18 = vperm.slane %v345_v15, 0  ;;  %v349_v20 = vperm.slane %v346_v17, 0  ;;  %v380_v21 = vrot.slane %v1161_v19, 1  ;;  %v1163_v25 = vld [vmem:[%s1782_s2 + $0x18] sm:$0x7] }
  0x18   : > { %282 = vrot.lane.b32.xlu2 %v278_v3, %s1301_s30  ;;  %v224_v5 = vld [vmem:[%s215_s8] sm:$0xff]  ;;  %v226_v6 = vld [vmem:[%s215_s8 + $0x10] sm:$0xff]  ;;  %v225_v10 = vld [vmem:[%s215_s8 + $0x8] sm:$0xff]  ;;  %v381_v23 = vrot.slane %v1161_v19, 2  ;;  %v435_v27 = vrot.slane %v1163_v25, 1  ;;  %v382_v28 = vperm.slane %v1161_v19, 0 }
  0x19   : > { %230 = vrot.lane.b32.xlu0 %v224_v5, %s1302_s9  ;;  %v383_v24 = vperm.slane %v380_v21, 0  ;;  %v436_v29 = vrot.slane %v1163_v25, 2  ;;  %v1164_v31 = vld [vmem:[%s1782_s2 + $0x1c] sm:$0x7]  ;;  %v437_v34 = vperm.slane %v1163_v25, 0  ;;  %vm218_vm1 = vcmask 388096  }
  0x1a   : > { %v384_v26 = vperm.slane %v381_v23, 0  ;;  %v438_v30 = vperm.slane %v435_v27, 0  ;;  %v470_v33 = vrot.slane %v1164_v31, 1  ;;  %v471_v35 = vrot.slane %v1164_v31, 2  ;;  %v1165_v37 = vld [vmem:[%s1782_s2 + $0x20] sm:$0x7] }
  0x1b   : > { %v439_v32 = vperm.slane %v436_v29, 0  ;;  %v505_v39 = vrot.slane %v1165_v37, 1  ;;  %v472_v40 = vperm.slane %v1164_v31, 0  ;;  %v506_v41 = vrot.slane %v1165_v37, 2  ;;  %v1166_v43 = vld [vmem:[%s1782_s2 + $0x24] sm:$0x7] }
  0x1c   : > { %v473_v36 = vperm.slane %v470_v33, 0  ;;  %v474_v38 = vperm.slane %v471_v35, 0  ;;  %v540_v45 = vrot.slane %v1166_v43, 1  ;;  %v507_v46 = vperm.slane %v1165_v37, 0  ;;  %v1450_v60 = vld [vmem:[%s1782_s2] sm:$0x7] }
  0x1d   : > { %v508_v42 = vperm.slane %v505_v39, 0  ;;  %v509_v44 = vperm.slane %v506_v41, 0  ;;  %v541_v47 = vrot.slane %v1166_v43, 2  ;;  %v542_v50 = vperm.slane %v1166_v43, 0  ;;  %v1457_v63 = vld [vmem:[%s1782_s2 + $0x14] sm:$0x7] }
  0x1e   : > { %234 = vrot.lane.b32.xlu1 %v226_v6, %s1302_s9  ;;  %v543_v48 = vperm.slane %v540_v45, 0  ;;  %v1305_v51 = vmov 0.0   ;;  %vm239_vm2 = vcmask 326720   ;;  %v258_v62 = vrot.slane %v1450_v60, 1  ;;  %v1462_v0 = vld [vmem:[%s1783_s3] sm:$0x7] }
  0x1f   : > { %v544_v49 = vperm.slane %v541_v47, 0  ;;  %217 = vst.msk [vmem:[#allocation2] sm:$0xff] %vm216_vm0, %v1305_v51  ;;  %v418_v1 = vrot.slane %v1457_v63, 1  ;;  %v245_v4 = vrot.slane %v1462_v0, 1  ;;  %s1307_s8 = smov 120   ;;  %vm1058_vm3 = vcmask 261120  }
  0x20   : > { %284 = vrot.lane.b32.xlu2 %v279_v8, %s1301_s30  ;;  %219 = vst.msk [vmem:[#allocation2 + $0x8] sm:$0xf] %vm218_vm1, %v1305_v51  ;;  %v261_v6 = vperm.slane %v258_v62, 0  ;;  %s1187_s29 = smul.u32 24, %s1357_s19 }
  0x21   : > { %232 = vrot.lane.b32.xlu0 %v225_v10, %s1302_s9  ;;  %220 = vst.msk [vmem:[#allocation2 + $0x10] sm:$0xff] %vm216_vm0, %v1305_v51  ;;  %v421_v7 = vperm.slane %v418_v1, 0  ;;  %v248_v9 = vperm.slane %v245_v4, 0  ;;  %v259_v4 = vrot.slane %v1450_v60, 2 }
  0x22   : > { %221 = vst.msk [vmem:[#allocation2 + $0x18] sm:$0xf] %vm218_vm1, %v1305_v51  ;;  %s1074_s14 = scalar_lea.hbm %s1784_s4, %s1187_s29 }
  0x23   : > { %222 = vst.msk [vmem:[#allocation2 + $0x20] sm:$0xff] %vm216_vm0, %v1305_v51  ;;  %s1077_s23 = sshll.u32 %s1074_s14, 4  ;;  %s1078_s23 = int_to_ptr.hbm [resolvable:$true] %s1077_s23 }
  0x24   : > { %223 = vst.msk [vmem:[#allocation2 + $0x28] sm:$0xf] %vm218_vm1, %v1305_v51  ;;  %s1251_s27 = sshra.s32 %s1078_s23, 4  ;;  %s1252_s27 = int_to_ptr.hbm [resolvable:$true] %s1251_s27 }
  0x25   : > { %s1253_s6 = scalar_lea.hbm %s1252_s27, 24  ;;  %p1258_p0 = scmp.lt.s32.totalorder %s1252_s27, %s1784_s4 }
  0x26   : > { %317 = vrot.lane.b32.xlu1 %v313_v12, %s1302_s9  ;;  %p1254_p11 = scmp.ne.s32.totalorder %s1252_s27, %s1253_s6 }
  0x28   : > { %319 = vrot.lane.b32.xlu2 %v314_v14, %s1302_s9  ;;  %p1255_p12 = pnand %p1254_p11, %p1374_p5 }
  0x29   : > { %315 = vrot.lane.b32.xlu0 %v312_v16, %s1302_s9 }
  0x2a   : > { %p1256_p13 = pneg %p1255_p12 }
  0x2e   : > { %352 = vrot.lane.b32.xlu1 %v348_v18, %s1303_s22 }
  0x30   : > { %354 = vrot.lane.b32.xlu2 %v349_v20, %s1303_s22 }
  0x31   : > { %350 = vrot.lane.b32.xlu0 %v347_v22, %s1303_s22 }
  0x36   : > { %387 = vrot.lane.b32.xlu1 %v383_v24, %s1304_s28 }
  0x38   : > { %389 = vrot.lane.b32.xlu2 %v384_v26, %s1304_s28 }
  0x39   : > { %385 = vrot.lane.b32.xlu0 %v382_v28, %s1304_s28 }
  0x3e   : > { %442 = vrot.lane.b32.xlu1 %v438_v30, %s1301_s30 }
  0x40   : > { %444 = vrot.lane.b32.xlu2 %v439_v32, %s1301_s30 }
  0x41   : > { %440 = vrot.lane.b32.xlu0 %v437_v34, %s1301_s30 }
  0x46   : > { %477 = vrot.lane.b32.xlu1 %v473_v36, %s1302_s9 }
  0x48   : > { %479 = vrot.lane.b32.xlu2 %v474_v38, %s1302_s9 }
  0x49   : > { %475 = vrot.lane.b32.xlu0 %v472_v40, %s1302_s9 }
  0x4e   : > { %512 = vrot.lane.b32.xlu1 %v508_v42, %s1303_s22 }
  0x50   : > { %514 = vrot.lane.b32.xlu2 %v509_v44, %s1303_s22 }
  0x51   : > { %510 = vrot.lane.b32.xlu0 %v507_v46, %s1303_s22 }
  0x56   : > { %547 = vrot.lane.b32.xlu1 %v543_v48, %s1304_s28 }
  0x58   : > { %549 = vrot.lane.b32.xlu2 %v544_v49, %s1304_s28 }
  0x59   : > { %545 = vrot.lane.b32.xlu0 %v542_v50, %s1304_s28 }
  0x72   : > { %v283_v52 = vpop.permute.xlu2 %282 }
  0x7a   : > { %v285_v53 = vpop.permute.xlu2 %284 }
  0x82   : > { %v320_v57 = vpop.permute.xlu2 %319 }
  0x88   : > { %v281_v54 = vpop.permute.xlu1 %280 }
  0x8a   : > { %v355_v8 = vpop.permute.xlu2 %354 }
  0x8b   : > { %v231_v55 = vpop.permute.xlu0 %230 }
  0x8c   : > { %240 = vst.msk [vmem:[#allocation2 + $0x2] sm:$0xff] %vm239_vm2, %v231_v55 }
  0x90   : > { %v235_v56 = vpop.permute.xlu1 %234 }
  0x91   : > { %242 = vst.msk [vmem:[#allocation2 + $0x22] sm:$0xff] %vm239_vm2, %v235_v56 }
  0x92   : > { %v390_v21 = vpop.permute.xlu2 %389 }
  0x93   : > { %v233_v58 = vpop.permute.xlu0 %232  ;;  %v1445_v59 = vld [vmem:[#allocation2] sm:$0xff] }
  0x94   : > { %241 = vst.msk [vmem:[#allocation2 + $0x12] sm:$0xff] %vm239_vm2, %v233_v58  ;;  %v289_v61 = vmul.f32 %v281_v54, %v1445_v59  ;;  %v1493_v32 = vld [vmem:[#allocation2 + $0x1] sm:$0xff]  ;;  %v1168_v54 = vld [vmem:[%s1782_s2 + $0x2c] sm:$0x7] }
  0x95   : > { %v597_v58 = vperm.slane %v1168_v54, 0  ;;  %v595_v1 = vrot.slane %v1168_v54, 1 }
  0x96   : > { %295 = vrot.lane.b32.xlu0 %v289_v61, %s1306_s7 }
  0x98   : > { %v1465_v2 = vld [vmem:[#allocation2 + $0x20] sm:$0xff]  ;;  %v318_v3 = vpop.permute.xlu1 %317 }
  0x99   : > { %v291_v5 = vmul.f32 %v285_v53, %v1465_v2  ;;  %v326_v16 = vmul.f32 %v320_v57, %v1465_v2  ;;  %v361_v24 = vmul.f32 %v355_v8, %v1465_v2  ;;  %v396_v29 = vmul.f32 %v390_v21, %v1465_v2  ;;  %v1495_v34 = vld [vmem:[#allocation2 + $0x21] sm:$0xff] }
  0x9a   : > { %v445_v30 = vpop.permute.xlu2 %444  ;;  %v596_v57 = vrot.slane %v1168_v54, 2  ;;  %v419_v21 = vrot.slane %v1457_v63, 2 }
  0x9b   : > { %299 = vrot.lane.b32.xlu2 %v291_v5, %s1306_s7  ;;  %v254_v10 = vld [vmem:[#allocation2 + $0x10] sm:$0xff]  ;;  %v316_v11 = vpop.permute.xlu0 %315  ;;  %v451_v37 = vmul.f32 %v445_v30, %v1495_v34  ;;  %v246_v5 = vrot.slane %v1462_v0, 2 }
  0x9c   : > { %v1471_v12 = vld [vmem:[#allocation2 + $0x11] sm:$0xff]  ;;  %v324_v13 = vmul.f32 %v316_v11, %v1445_v59  ;;  %v290_v14 = vmul.f32 %v283_v52, %v254_v10  ;;  %v267_v15 = vmul.f32 %v261_v6, %v254_v10  ;;  %v325_v22 = vmul.f32 %v318_v3, %v254_v10 }
  0x9d   : > { %v1476_v17 = vmul.f32 %v421_v7, %v1471_v12  ;;  %v599_v62 = vperm.slane %v596_v57, 0  ;;  %v598_v3 = vperm.slane %v595_v1, 0  ;;  %v262_v6 = vperm.slane %v259_v4, 0  ;;  %v1540_v57 = vld [vmem:[#allocation2 + $0x22] sm:$0xff] }
  0x9e   : > { %297 = vrot.lane.b32.xlu1 %v290_v14, %s1306_s7  ;;  %330 = vrot.lane.b32.xlu0 %v324_v13, %s1307_s8  ;;  %v1480_v18 = vadd.f32 %v267_v15, %v248_v9  ;;  %v249_v7 = vperm.slane %v246_v5, 0  ;;  %v260_v14 = vperm.slane %v1450_v60, 0 }
  0x9f   : > { %v268_v8 = vmul.f32 %v262_v6, %v1465_v2 }
  0xa0   : > { %v353_v19 = vpop.permute.xlu1 %352 }
  0xa1   : > { %v360_v27 = vmul.f32 %v353_v19, %v254_v10  ;;  %v271_v9 = vadd.f32 %v268_v8, %v249_v7  ;;  %v266_v19 = vmul.f32 %v260_v14, %v1445_v59  ;;  %v1167_v8 = vld [vmem:[%s1782_s2 + $0x28] sm:$0x7] }
  0xa2   : > { %v480_v38 = vpop.permute.xlu2 %479 }
  0xa3   : > { %334 = vrot.lane.b32.xlu2 %v326_v16, %s1307_s8  ;;  %v351_v20 = vpop.permute.xlu0 %350  ;;  %v486_v43 = vmul.f32 %v480_v38, %v1495_v34  ;;  %v247_v16 = vperm.slane %v1462_v0, 0 }
  0xa4   : > { %v359_v23 = vmul.f32 %v351_v20, %v1445_v59 }
  0xa6   : > { %332 = vrot.lane.b32.xlu1 %v325_v22, %s1307_s8  ;;  %365 = vrot.lane.b32.xlu0 %v359_v23, %s1308_s10  ;;  %v269_v22 = vadd.f32 %v266_v19, %v247_v16 }
  0xa8   : > { %v388_v25 = vpop.permute.xlu1 %387 }
  0xa9   : > { %v395_v35 = vmul.f32 %v388_v25, %v254_v10 }
  0xaa   : > { %v515_v44 = vpop.permute.xlu2 %514 }
  0xab   : > { %369 = vrot.lane.b32.xlu2 %v361_v24, %s1308_s10  ;;  %v386_v26 = vpop.permute.xlu0 %385  ;;  %v521_v48 = vmul.f32 %v515_v44, %v1495_v34  ;;  %v422_v24 = vperm.slane %v419_v21, 0 }
  0xac   : > { %v394_v28 = vmul.f32 %v386_v26, %v1445_v59 }
  0xae   : > { %367 = vrot.lane.b32.xlu1 %v360_v27, %s1308_s10  ;;  %400 = vrot.lane.b32.xlu0 %v394_v28, %s1309_s11  ;;  %v428_v27 = vmul.f32 %v422_v24, %v1495_v34 }
  0xb0   : > { %v443_v31 = vpop.permute.xlu1 %442 }
  0xb1   : > { %v450_v40 = vmul.f32 %v443_v31, %v1471_v12 }
  0xb2   : > { %v550_v51 = vpop.permute.xlu2 %549 }
  0xb3   : > { %404 = vrot.lane.b32.xlu2 %v396_v29, %s1309_s11  ;;  %v441_v33 = vpop.permute.xlu0 %440  ;;  %v556_v55 = vmul.f32 %v550_v51, %v1495_v34 }
  0xb4   : > { %v449_v36 = vmul.f32 %v441_v33, %v1493_v32 }
  0xb6   : > { %402 = vrot.lane.b32.xlu1 %v395_v35, %s1309_s11  ;;  %455 = vrot.lane.b32.xlu0 %v449_v36, %s1306_s7 }
  0xb8   : > { %v478_v42 = vpop.permute.xlu1 %477 }
  0xb9   : > { %v485_v46 = vmul.f32 %v478_v42, %v1471_v12 }
  0xbb   : > { %459 = vrot.lane.b32.xlu2 %v451_v37, %s1306_s7  ;;  %v476_v39 = vpop.permute.xlu0 %475 }
  0xbc   : > { %v484_v41 = vmul.f32 %v476_v39, %v1493_v32 }
  0xbe   : > { %457 = vrot.lane.b32.xlu1 %v450_v40, %s1306_s7  ;;  %490 = vrot.lane.b32.xlu0 %v484_v41, %s1307_s8  ;;  %v420_v40 = vperm.slane %v1457_v63, 0 }
  0xc0   : > { %v513_v49 = vpop.permute.xlu1 %512  ;;  %v426_v44 = vmul.f32 %v420_v40, %v1493_v32 }
  0xc1   : > { %v520_v52 = vmul.f32 %v513_v49, %v1471_v12 }
  0xc3   : > { %494 = vrot.lane.b32.xlu2 %v486_v43, %s1307_s8  ;;  %v511_v45 = vpop.permute.xlu0 %510 }
  0xc4   : > { %v519_v47 = vmul.f32 %v511_v45, %v1493_v32 }
  0xc6   : > { %492 = vrot.lane.b32.xlu1 %v485_v46, %s1307_s8  ;;  %525 = vrot.lane.b32.xlu0 %v519_v47, %s1308_s10 }
  0xc8   : > { %v548_v56 = vpop.permute.xlu1 %547 }
  0xc9   : > { %v555_v61 = vmul.f32 %v548_v56, %v1471_v12 }
  0xcb   : > { %529 = vrot.lane.b32.xlu2 %v521_v48, %s1308_s10  ;;  %v546_v50 = vpop.permute.xlu0 %545 }
  0xcc   : > { %v554_v53 = vmul.f32 %v546_v50, %v1493_v32  ;;  %v1169_v32 = vld [vmem:[%s1782_s2 + $0x30] sm:$0x7] }
  0xce   : > { %527 = vrot.lane.b32.xlu1 %v520_v52, %s1308_s10  ;;  %560 = vrot.lane.b32.xlu0 %v554_v53, %s1309_s11 }
  0xd3   : > { %564 = vrot.lane.b32.xlu2 %v556_v55, %s1309_s11 }
  0xd6   : > { %562 = vrot.lane.b32.xlu1 %v555_v61, %s1309_s11  ;;  %600 = vrot.lane.b32.xlu0 %v597_v58, %s1301_s30 }
  0xdb   : > { %604 = vrot.lane.b32.xlu2 %v599_v62, %s1301_s30  ;;  %v631_v62 = vrot.slane %v1169_v32, 2 }
  0xdd   : > { %v634_v5 = vperm.slane %v631_v62, 0 }
  0xde   : > { %602 = vrot.lane.b32.xlu1 %v598_v3, %s1301_s30 }
  0xf5   : > { %v300_v10 = vpop.permute.xlu2 %299 }
  0xf6   : > { %v306_v11 = vadd.f32 %v300_v10, %v271_v9 }
  0xfd   : > { %v335_v12 = vpop.permute.xlu2 %334 }
  0xfe   : > { %v341_v13 = vadd.f32 %v335_v12, %v306_v11  ;;  %v578_v11 = vrot.slane %v1167_v8, 1 }
 0x100   : > { %v581_v12 = vperm.slane %v578_v11, 0 }
 0x105   : > { %v370_v15 = vpop.permute.xlu2 %369 }
 0x106   : > { %v376_v20 = vadd.f32 %v370_v15, %v341_v13  ;;  %v1551_v13 = vld [vmem:[#allocation2 + $0x12] sm:$0xff]  ;;  %v1553_v15 = vld [vmem:[#allocation2 + $0x2] sm:$0xff] }
 0x107   : > { %v587_v21 = vmul.f32 %v581_v12, %v1551_v13 }
 0x108   : > { %v296_v23 = vpop.permute.xlu0 %295 }
 0x109   : > { %v304_v25 = vadd.f32 %v296_v23, %v269_v22  ;;  %v632_v23 = vperm.slane %v1169_v32, 0 }
 0x10d   : > { %v405_v2 = vpop.permute.xlu2 %404 }
 0x10e   : > { %v411_v26 = vadd.f32 %v405_v2, %v376_v20  ;;  %v630_v2 = vrot.slane %v1169_v32, 1 }
 0x110   : > { %v431_v28 = vadd.f32 %v428_v27, %v411_v26  ;;  %v298_v29 = vpop.permute.xlu1 %297  ;;  %v331_v30 = vpop.permute.xlu0 %330  ;;  %v633_v26 = vperm.slane %v630_v2, 0  ;;  %v579_v27 = vrot.slane %v1167_v8, 2 }
 0x111   : > { %v305_v60 = vadd.f32 %v298_v29, %v1480_v18  ;;  %v339_v31 = vadd.f32 %v331_v30, %v304_v25 }
 0x115   : > { %v460_v0 = vpop.permute.xlu2 %459 }
 0x116   : > { %v466_v33 = vadd.f32 %v460_v0, %v431_v28  ;;  %v582_v28 = vperm.slane %v579_v27, 0  ;;  %v1174_v27 = vld [vmem:[%s1782_s2 + $0x44] sm:$0x7] }
 0x118   : > { %v333_v59 = vpop.permute.xlu1 %332  ;;  %v366_v35 = vpop.permute.xlu0 %365  ;;  %v588_v29 = vmul.f32 %v582_v28, %v1540_v57 }
 0x119   : > { %v340_v36 = vadd.f32 %v333_v59, %v305_v60  ;;  %v374_v37 = vadd.f32 %v366_v35, %v339_v31 }
 0x11d   : > { %v495_v38 = vpop.permute.xlu2 %494 }
 0x11e   : > { %v501_v39 = vadd.f32 %v495_v38, %v466_v33  ;;  %v1170_v33 = vld [vmem:[%s1782_s2 + $0x34] sm:$0x7] }
 0x11f   : > { %v666_v35 = vrot.slane %v1170_v33, 2 }
 0x120   : > { %v368_v41 = vpop.permute.xlu1 %367  ;;  %v401_v42 = vpop.permute.xlu0 %400 }
 0x121   : > { %v375_v43 = vadd.f32 %v368_v41, %v340_v36  ;;  %v409_v34 = vadd.f32 %v401_v42, %v374_v37  ;;  %v669_v36 = vperm.slane %v666_v35, 0  ;;  %v580_v37 = vperm.slane %v1167_v8, 0 }
 0x123   : > { %v429_v46 = vadd.f32 %v426_v44, %v409_v34  ;;  %v586_v38 = vmul.f32 %v580_v37, %v1553_v15 }
 0x125   : > { %v530_v45 = vpop.permute.xlu2 %529 }
 0x126   : > { %v536_v18 = vadd.f32 %v530_v45, %v501_v39  ;;  %v667_v45 = vperm.slane %v1170_v33, 0 }
 0x128   : > { %v403_v47 = vpop.permute.xlu1 %402  ;;  %v456_v48 = vpop.permute.xlu0 %455 }
 0x129   : > { %v410_v49 = vadd.f32 %v403_v47, %v375_v43  ;;  %v464_v50 = vadd.f32 %v456_v48, %v429_v46  ;;  %v665_v47 = vrot.slane %v1170_v33, 1 }
 0x12b   : > { %v430_v52 = vadd.f32 %v1476_v17, %v410_v49  ;;  %v668_v48 = vperm.slane %v665_v47, 0 }
 0x12d   : > { %v565_v51 = vpop.permute.xlu2 %564 }
 0x12e   : > { %v571_v53 = vadd.f32 %v565_v51, %v536_v18 }
 0x130   : > { %v458_v54 = vpop.permute.xlu1 %457  ;;  %v491_v55 = vpop.permute.xlu0 %490  ;;  %v591_v30 = vadd.f32 %v588_v29, %v571_v53 }
 0x131   : > { %v465_v63 = vadd.f32 %v458_v54, %v430_v52  ;;  %v499_v56 = vadd.f32 %v491_v55, %v464_v50  ;;  %v1171_v52 = vld [vmem:[%s1782_s2 + $0x38] sm:$0x7] }
 0x132   : > { %v701_v54 = vrot.slane %v1171_v52, 2 }
 0x134   : > { %v704_v55 = vperm.slane %v701_v54, 0 }
 0x135   : > { %v605_v58 = vpop.permute.xlu2 %604 }
 0x136   : > { %v611_v61 = vmul.f32 %v605_v58, %v1540_v57 }
 0x138   : > { %619 = vrot.lane.b32.xlu2 %v611_v61, %s1306_s7  ;;  %v493_v1 = vpop.permute.xlu1 %492  ;;  %v526_v3 = vpop.permute.xlu0 %525 }
 0x139   : > { %v500_v17 = vadd.f32 %v493_v1, %v465_v63  ;;  %v534_v4 = vadd.f32 %v526_v3, %v499_v56  ;;  %v702_v1 = vperm.slane %v1171_v52, 0 }
 0x140   : > { %639 = vrot.lane.b32.xlu2 %v634_v5, %s1302_s9  ;;  %v528_v6 = vpop.permute.xlu1 %527  ;;  %v561_v7 = vpop.permute.xlu0 %560 }
 0x141   : > { %v535_v9 = vadd.f32 %v528_v6, %v500_v17  ;;  %v569_v10 = vadd.f32 %v561_v7, %v534_v4  ;;  %v700_v4 = vrot.slane %v1171_v52, 1 }
 0x143   : > { %v589_v39 = vadd.f32 %v586_v38, %v569_v10  ;;  %v703_v5 = vperm.slane %v700_v4, 0 }
 0x148   : > { %v563_v14 = vpop.permute.xlu1 %562  ;;  %v601_v16 = vpop.permute.xlu0 %600 }
 0x149   : > { %v570_v19 = vadd.f32 %v563_v14, %v535_v9  ;;  %v609_v20 = vmul.f32 %v601_v16, %v1553_v15  ;;  %v1173_v9 = vld [vmem:[%s1782_s2 + $0x40] sm:$0x7] }
 0x14a   : > { %v756_v11 = vrot.slane %v1173_v9, 2 }
 0x14b   : > { %615 = vrot.lane.b32.xlu0 %v609_v20, %s1306_s7  ;;  %v590_v22 = vadd.f32 %v587_v21, %v570_v19 }
 0x14c   : > { %v759_v12 = vperm.slane %v756_v11, 0 }
 0x150   : > { %v603_v24 = vpop.permute.xlu1 %602 }
 0x151   : > { %v610_v25 = vmul.f32 %v603_v24, %v1551_v13 }
 0x153   : > { %617 = vrot.lane.b32.xlu1 %v610_v25, %s1306_s7  ;;  %635 = vrot.lane.b32.xlu0 %v632_v23, %s1302_s9  ;;  %v1596_v25 = vld [vmem:[#allocation2 + $0x23] sm:$0xff] }
 0x15b   : > { %637 = vrot.lane.b32.xlu1 %v633_v26, %s1302_s9  ;;  %v757_v26 = vperm.slane %v1173_v9, 0 }
 0x192   : > { %v620_v60 = vpop.permute.xlu2 %619 }
 0x193   : > { %v626_v31 = vadd.f32 %v620_v60, %v591_v30  ;;  %v755_v30 = vrot.slane %v1173_v9, 1 }
 0x19a   : > { %v640_v0 = vpop.permute.xlu2 %639 }
 0x19b   : > { %v646_v59 = vmul.f32 %v640_v0, %v1540_v57  ;;  %v1172_v0 = vld [vmem:[%s1782_s2 + $0x3c] sm:$0x7] }
 0x19c   : > { %v739_v33 = vrot.slane %v1172_v0, 2  ;;  %v740_v11 = vperm.slane %v1172_v0, 0 }
 0x19d   : > { %654 = vrot.lane.b32.xlu2 %v646_v59, %s1307_s8 }
 0x1a5   : > { %674 = vrot.lane.b32.xlu2 %v669_v36, %s1303_s22 }
 0x1bd   : > { %v616_v40 = vpop.permute.xlu0 %615 }
 0x1be   : > { %v624_v41 = vadd.f32 %v616_v40, %v589_v39  ;;  %v1615_v39 = vld [vmem:[%s1782_s2 + $0x48] sm:$0x7] }
 0x1c5   : > { %v618_v42 = vpop.permute.xlu1 %617  ;;  %v636_v43 = vpop.permute.xlu0 %635 }
 0x1c6   : > { %v625_v34 = vadd.f32 %v618_v42, %v590_v22  ;;  %v644_v44 = vmul.f32 %v636_v43, %v1553_v15 }
 0x1c8   : > { %650 = vrot.lane.b32.xlu0 %v644_v44, %s1307_s8 }
 0x1cd   : > { %v638_v46 = vpop.permute.xlu1 %637 }
 0x1ce   : > { %v645_v18 = vmul.f32 %v638_v46, %v1551_v13 }
 0x1d0   : > { %652 = vrot.lane.b32.xlu1 %v645_v18, %s1307_s8  ;;  %670 = vrot.lane.b32.xlu0 %v667_v45, %s1303_s22  ;;  %v1624_v45 = vld [vmem:[%s1782_s2 + $0x4c] sm:$0x7]  ;;  %v1626_v18 = vld [vmem:[#allocation2 + $0x13] sm:$0xff] }
 0x1d1   : > { %v862_v47 = vperm.slane %v1624_v45, 0 }
 0x1d8   : > { %672 = vrot.lane.b32.xlu1 %v668_v48, %s1303_s22 }
 0x1f7   : > { %v655_v49 = vpop.permute.xlu2 %654 }
 0x1f8   : > { %v661_v50 = vadd.f32 %v655_v49, %v626_v31  ;;  %v758_v31 = vperm.slane %v755_v30, 0 }
 0x1ff   : > { %v675_v51 = vpop.permute.xlu2 %674 }
 0x200   : > { %v681_v53 = vmul.f32 %v675_v51, %v1540_v57 }
 0x202   : > { %689 = vrot.lane.b32.xlu2 %v681_v53, %s1308_s10 }
 0x20a   : > { %709 = vrot.lane.b32.xlu2 %v704_v55, %s1304_s28  ;;  %v1638_v55 = vld [vmem:[%s1782_s2 + $0x54] sm:$0x7] }
 0x23a   : > { %v651_v63 = vpop.permute.xlu0 %650 }
 0x23b   : > { %v659_v56 = vadd.f32 %v651_v63, %v624_v41  ;;  %v826_v41 = vrot.slane %v1615_v39, 2  ;;  %v917_v63 = vperm.slane %v1638_v55, 0 }
 0x23d   : > { %v829_v42 = vperm.slane %v826_v41, 0 }
 0x242   : > { %v653_v58 = vpop.permute.xlu1 %652  ;;  %v671_v32 = vpop.permute.xlu0 %670 }
 0x243   : > { %v660_v61 = vadd.f32 %v653_v58, %v625_v34  ;;  %v679_v62 = vmul.f32 %v671_v32, %v1553_v15  ;;  %v738_v34 = vrot.slane %v1172_v0, 1  ;;  %v792_v58 = vperm.slane %v1174_v27, 0 }
 0x244   : > { %v860_v0 = vrot.slane %v1624_v45, 1 }
 0x245   : > { %685 = vrot.lane.b32.xlu0 %v679_v62, %s1308_s10  ;;  %v741_v46 = vperm.slane %v738_v34, 0  ;;  %v1179_v62 = vld [vmem:[%s1782_s2 + $0x58] sm:$0x7] }
 0x247   : > { %v747_v52 = vmul.f32 %v741_v46, %v1626_v18 }
 0x24a   : > { %v673_v3 = vpop.permute.xlu1 %672 }
 0x24b   : > { %v680_v17 = vmul.f32 %v673_v3, %v1551_v13 }
 0x24d   : > { %687 = vrot.lane.b32.xlu1 %v680_v17, %s1308_s10  ;;  %705 = vrot.lane.b32.xlu0 %v702_v1, %s1304_s28  ;;  %v952_v1 = vperm.slane %v1179_v62, 0  ;;  %v1653_v17 = vld [vmem:[%s1782_s2 + $0x5c] sm:$0x7] }
 0x24e   : > { %v987_v4 = vperm.slane %v1653_v17, 0  ;;  %v985_v34 = vrot.slane %v1653_v17, 1  ;;  %v986_v46 = vrot.slane %v1653_v17, 2 }
 0x255   : > { %707 = vrot.lane.b32.xlu1 %v703_v5, %s1304_s28  ;;  %v1660_v5 = vld [vmem:[%s1782_s2 + $0x60] sm:$0x7] }
 0x25c   : > { %v690_v6 = vpop.permute.xlu2 %689 }
 0x25d   : > { %v696_v7 = vadd.f32 %v690_v6, %v661_v50  ;;  %v1629_v50 = vld [vmem:[#allocation2 + $0x3] sm:$0xff]  ;;  %v1022_v6 = vperm.slane %v1660_v5, 0 }
 0x264   : > { %v710_v8 = vpop.permute.xlu2 %709 }
 0x265   : > { %v716_v10 = vmul.f32 %v710_v8, %v1540_v57 }
 0x267   : > { %724 = vrot.lane.b32.xlu2 %v716_v10, %s1309_s11 }
 0x26f   : > { %764 = vrot.lane.b32.xlu2 %v759_v12, %s1301_s30  ;;  %v746_v12 = vmul.f32 %v740_v11, %v1629_v50  ;;  %v893_v11 = vld [vmem:[#allocation2 + $0x14] sm:$0xff] }
 0x2b7   : > { %v686_v14 = vpop.permute.xlu0 %685 }
 0x2b8   : > { %v694_v16 = vadd.f32 %v686_v14, %v659_v56 }
 0x2bf   : > { %v688_v20 = vpop.permute.xlu1 %687  ;;  %v706_v23 = vpop.permute.xlu0 %705 }
 0x2c0   : > { %v695_v22 = vadd.f32 %v688_v20, %v660_v61  ;;  %v714_v24 = vmul.f32 %v706_v23, %v1553_v15  ;;  %v791_v15 = vrot.slane %v1174_v27, 2  ;;  %v790_v61 = vrot.slane %v1174_v27, 1 }
 0x2c1   : > { %v725_v19 = vpop.permute.xlu2 %724 }
 0x2c2   : > { %v731_v21 = vadd.f32 %v725_v19, %v696_v7  ;;  %720 = vrot.lane.b32.xlu0 %v714_v24, %s1309_s11  ;;  %v794_v60 = vperm.slane %v791_v15, 0  ;;  %v793_v3 = vperm.slane %v790_v61, 0 }
 0x2c7   : > { %v708_v2 = vpop.permute.xlu1 %707 }
 0x2c8   : > { %v715_v29 = vmul.f32 %v708_v2, %v1551_v13  ;;  %v742_v13 = vperm.slane %v739_v33, 0 }
 0x2c9   : > { %v765_v57 = vpop.permute.xlu2 %764 }
 0x2ca   : > { %v771_v28 = vmul.f32 %v765_v57, %v1596_v25  ;;  %722 = vrot.lane.b32.xlu1 %v715_v29, %s1309_s11  ;;  %760 = vrot.lane.b32.xlu0 %v757_v26, %s1301_s30  ;;  %v748_v59 = vmul.f32 %v742_v13, %v1596_v25  ;;  %v827_v57 = vperm.slane %v1615_v39, 0  ;;  %v825_v26 = vrot.slane %v1615_v39, 1 }
 0x2cb   : > { %v863_v13 = vperm.slane %v860_v0, 0  ;;  %v916_v39 = vrot.slane %v1638_v55, 2 }
 0x2cc   : > { %779 = vrot.lane.b32.xlu2 %v771_v28, %s1306_s7  ;;  %v751_v35 = vadd.f32 %v748_v59, %v731_v21  ;;  %v828_v27 = vperm.slane %v825_v26, 0 }
 0x2cd   : > { %v919_v41 = vperm.slane %v916_v39, 0 }
 0x2d2   : > { %762 = vrot.lane.b32.xlu1 %v758_v31, %s1301_s30 }
 0x2d4   : > { %799 = vrot.lane.b32.xlu2 %v794_v60, %s1302_s9 }
 0x326   : > { %v780_v36 = vpop.permute.xlu2 %779 }
 0x327   : > { %v786_v37 = vadd.f32 %v780_v36, %v751_v35  ;;  %v861_v35 = vrot.slane %v1624_v45, 2  ;;  %v915_v36 = vrot.slane %v1638_v55, 1  ;;  %v988_v45 = vperm.slane %v985_v34, 0 }
 0x32e   : > { %v800_v38 = vpop.permute.xlu2 %799 }
 0x32f   : > { %v806_v40 = vmul.f32 %v800_v38, %v1596_v25  ;;  %v918_v38 = vperm.slane %v915_v36, 0 }
 0x331   : > { %814 = vrot.lane.b32.xlu2 %v806_v40, %s1307_s8  ;;  %v950_v40 = vrot.slane %v1179_v62, 1 }
 0x334   : > { %v721_v43 = vpop.permute.xlu0 %720 }
 0x335   : > { %v729_v44 = vadd.f32 %v721_v43, %v694_v16  ;;  %v951_v43 = vrot.slane %v1179_v62, 2 }
 0x337   : > { %v749_v14 = vadd.f32 %v746_v12, %v729_v44  ;;  %v954_v44 = vperm.slane %v951_v43, 0 }
 0x339   : > { %834 = vrot.lane.b32.xlu2 %v829_v42, %s1303_s22  ;;  %v953_v42 = vperm.slane %v950_v40, 0 }
 0x33c   : > { %v723_v48 = vpop.permute.xlu1 %722  ;;  %v761_v51 = vpop.permute.xlu0 %760 }
 0x33d   : > { %v730_v49 = vadd.f32 %v723_v48, %v695_v22  ;;  %v769_v53 = vmul.f32 %v761_v51, %v1629_v50 }
 0x33f   : > { %v750_v54 = vadd.f32 %v747_v52, %v730_v49  ;;  %775 = vrot.lane.b32.xlu0 %v769_v53, %s1306_s7  ;;  %v989_v49 = vperm.slane %v986_v46, 0  ;;  %v1021_v52 = vrot.slane %v1660_v5, 2 }
 0x341   : > { %865 = vrot.lane.b32.xlu2 %v862_v47, %s1304_s28  ;;  %v1020_v47 = vrot.slane %v1660_v5, 1  ;;  %v1024_v53 = vperm.slane %v1021_v52, 0 }
 0x343   : > { %v1023_v51 = vperm.slane %v1020_v47, 0 }
 0x344   : > { %v763_v56 = vpop.permute.xlu1 %762 }
 0x345   : > { %v770_v32 = vmul.f32 %v763_v56, %v1626_v18 }
 0x347   : > { %777 = vrot.lane.b32.xlu1 %v770_v32, %s1306_s7  ;;  %795 = vrot.lane.b32.xlu0 %v792_v58, %s1302_s9 }
 0x349   : > { %920 = vrot.lane.b32.xlu2 %v917_v63, %s1301_s30  ;;  %v892_v63 = vld [vmem:[#allocation2 + $0x4] sm:$0xff] }
 0x34f   : > { %797 = vrot.lane.b32.xlu1 %v793_v3, %s1302_s9 }
 0x351   : > { %955 = vrot.lane.b32.xlu2 %v952_v1, %s1302_s9 }
 0x359   : > { %990 = vrot.lane.b32.xlu2 %v987_v4, %s1303_s22 }
 0x361   : > { %1025 = vrot.lane.b32.xlu2 %v1022_v6, %s1304_s28 }
 0x38b   : > { %v815_v7 = vpop.permute.xlu2 %814 }
 0x38c   : > { %v1664_v8 = vadd.f32 %v815_v7, %v786_v37  ;;  %v864_v37 = vperm.slane %v861_v35, 0 }
 0x393   : > { %v835_v9 = vpop.permute.xlu2 %834 }
 0x394   : > { %v841_v10 = vmul.f32 %v835_v9, %v1596_v25 }
 0x396   : > { %849 = vrot.lane.b32.xlu2 %v841_v10, %s1308_s10 }
 0x39b   : > { %v866_v48 = vpop.permute.xlu2 %865 }
 0x39c   : > { %v874_v55 = vmul.f32 %v866_v48, %v1629_v50 }
 0x3b1   : > { %v776_v16 = vpop.permute.xlu0 %775 }
 0x3b2   : > { %v784_v19 = vadd.f32 %v776_v16, %v749_v14  ;;  %v894_v16 = vld [vmem:[#allocation2 + $0x24] sm:$0xff] }
 0x3b9   : > { %v778_v20 = vpop.permute.xlu1 %777  ;;  %v796_v22 = vpop.permute.xlu0 %795 }
 0x3ba   : > { %v785_v21 = vadd.f32 %v778_v20, %v750_v54  ;;  %v804_v23 = vmul.f32 %v796_v22, %v1629_v50  ;;  %v921_v54 = vpop.permute.xlu2 %920 }
 0x3bb   : > { %v929_v56 = vmul.f32 %v921_v54, %v892_v63 }
 0x3bc   : > { %810 = vrot.lane.b32.xlu0 %v804_v23, %s1307_s8 }
 0x3c1   : > { %v798_v24 = vpop.permute.xlu1 %797 }
 0x3c2   : > { %v805_v2 = vmul.f32 %v798_v24, %v1626_v18  ;;  %v956_v58 = vpop.permute.xlu2 %955 }
 0x3c3   : > { %v964_v32 = vmul.f32 %v956_v58, %v892_v63 }
 0x3c4   : > { %812 = vrot.lane.b32.xlu1 %v805_v2, %s1307_s8  ;;  %830 = vrot.lane.b32.xlu0 %v827_v57, %s1303_s22 }
 0x3ca   : > { %v991_v61 = vpop.permute.xlu2 %990 }
 0x3cb   : > { %v999_v62 = vmul.f32 %v991_v61, %v892_v63 }
 0x3cc   : > { %832 = vrot.lane.b32.xlu1 %v828_v27, %s1303_s22 }
 0x3d2   : > { %v1026_v1 = vpop.permute.xlu2 %1025 }
 0x3d3   : > { %v1034_v3 = vmul.f32 %v1026_v1, %v892_v63 }
 0x3f0   : > { %v850_v43 = vpop.permute.xlu2 %849 }
 0x42e   : > { %v811_v28 = vpop.permute.xlu0 %810 }
 0x42f   : > { %v819_v29 = vadd.f32 %v811_v28, %v784_v19 }
 0x436   : > { %v813_v15 = vpop.permute.xlu1 %812  ;;  %v831_v60 = vpop.permute.xlu0 %830 }
 0x437   : > { %v820_v30 = vadd.f32 %v813_v15, %v785_v21  ;;  %v839_v31 = vmul.f32 %v831_v60, %v1629_v50  ;;  %v1177_v60 = vld [vmem:[%s1782_s2 + $0x50] sm:$0x7] }
 0x438   : > { %v900_v0 = vperm.slane %v1177_v60, 0  ;;  %v899_v47 = vrot.slane %v1177_v60, 2 }
 0x439   : > { %845 = vrot.lane.b32.xlu0 %v839_v31, %s1308_s10 }
 0x43a   : > { %v902_v54 = vperm.slane %v899_v47, 0 }
 0x43e   : > { %v833_v33 = vpop.permute.xlu1 %832 }
 0x43f   : > { %v840_v59 = vmul.f32 %v833_v33, %v1626_v18 }
 0x441   : > { %847 = vrot.lane.b32.xlu1 %v840_v59, %s1308_s10  ;;  %867 = vrot.lane.b32.xlu0 %v863_v13, %s1304_s28  ;;  %v906_v13 = vmul.f32 %v900_v0, %v892_v63 }
 0x449   : > { %869 = vrot.lane.b32.xlu1 %v864_v37, %s1304_s28  ;;  %922 = vrot.lane.b32.xlu0 %v918_v38, %s1301_s30 }
 0x451   : > { %924 = vrot.lane.b32.xlu1 %v919_v41, %s1301_s30  ;;  %957 = vrot.lane.b32.xlu0 %v953_v42, %s1302_s9 }
 0x459   : > { %959 = vrot.lane.b32.xlu1 %v954_v44, %s1302_s9  ;;  %992 = vrot.lane.b32.xlu0 %v988_v45, %s1303_s22  ;;  %v898_v45 = vrot.slane %v1177_v60, 1 }
 0x45b   : > { %v901_v46 = vperm.slane %v898_v45, 0 }
 0x45d   : > { %v907_v52 = vmul.f32 %v901_v46, %v893_v11 }
 0x461   : > { %994 = vrot.lane.b32.xlu1 %v989_v49, %s1303_s22  ;;  %1027 = vrot.lane.b32.xlu0 %v1023_v51, %s1304_s28 }
 0x469   : > { %1029 = vrot.lane.b32.xlu1 %v1024_v53, %s1304_s28  ;;  %880 = vrot.lane.b32.xlu0 %v874_v55, %s1309_s11  ;;  %s203_s28 = sand.u32 1, %s1291_s16   ;;  %v856_v53 = vadd.f32 %v850_v43, %v1664_v8 }
 0x46a   : > { %s1063_s19 = scalar_lea.sflag [#allocation4], %s203_s28 }
 0x471   : > { %935 = vrot.lane.b32.xlu0 %v929_v56, %s1306_s7  ;;  %v908_v56 = vmul.f32 %v902_v54, %v894_v16 }
 0x479   : > { %970 = vrot.lane.b32.xlu0 %v964_v32, %s1307_s8 }
 0x481   : > { %1005 = vrot.lane.b32.xlu0 %v999_v62, %s1308_s10 }
 0x489   : > { %1040 = vrot.lane.b32.xlu0 %v1034_v3, %s1309_s11 }
 0x4ab   : > { %v846_v50 = vpop.permute.xlu0 %845 }
 0x4ac   : > { %v854_v17 = vadd.f32 %v846_v50, %v819_v29 }
 0x4b3   : > { %v848_v4 = vpop.permute.xlu1 %847  ;;  %v868_v6 = vpop.permute.xlu0 %867 }
 0x4b4   : > { %v1705_v5 = vadd.f32 %v848_v4, %v820_v30  ;;  %v875_v7 = vmul.f32 %v868_v6, %v1626_v18 }
 0x4b6   : > { %882 = vrot.lane.b32.xlu1 %v875_v7, %s1309_s11 }
 0x4bb   : > { %v870_v9 = vpop.permute.xlu1 %869  ;;  %v923_v12 = vpop.permute.xlu0 %922 }
 0x4bc   : > { %v876_v10 = vmul.f32 %v870_v9, %v1596_v25  ;;  %v930_v14 = vmul.f32 %v923_v12, %v893_v11 }
 0x4be   : > { %884 = vrot.lane.b32.xlu2 %v876_v10, %s1309_s11  ;;  %937 = vrot.lane.b32.xlu1 %v930_v14, %s1306_s7 }
 0x4c3   : > { %v925_v19 = vpop.permute.xlu1 %924  ;;  %v958_v21 = vpop.permute.xlu0 %957 }
 0x4c4   : > { %v931_v20 = vmul.f32 %v925_v19, %v894_v16  ;;  %v965_v22 = vmul.f32 %v958_v21, %v893_v11 }
 0x4c6   : > { %939 = vrot.lane.b32.xlu2 %v931_v20, %s1306_s7  ;;  %972 = vrot.lane.b32.xlu1 %v965_v22, %s1307_s8  ;;  %s1257_s7 = scalar_lea.hbm %s1784_s4, 48 }
 0x4c7   : > { %p1259_p1 = scmp.lt.s32.totalorder %s1257_s7, %s1253_s6 }
 0x4c9   : > { %p1260_p2 = por %p1259_p1, %p1258_p0 }
 0x4cb   : > { %v960_v18 = vpop.permute.xlu1 %959  ;;  %v993_v24 = vpop.permute.xlu0 %992  ;;  %p1261_p3 = pnand %p1260_p2, %p1256_p13 }
 0x4cc   : > { %v966_v23 = vmul.f32 %v960_v18, %v894_v16  ;;  %v1000_v25 = vmul.f32 %v993_v24, %v893_v11 }
 0x4ce   : > { %974 = vrot.lane.b32.xlu2 %v966_v23, %s1307_s8  ;;  %1007 = vrot.lane.b32.xlu1 %v1000_v25, %s1308_s10 }
 0x4d3   : > { %v995_v57 = vpop.permute.xlu1 %994  ;;  %v1028_v26 = vpop.permute.xlu0 %1027 }
 0x4d4   : > { %v1001_v2 = vmul.f32 %v995_v57, %v894_v16  ;;  %v1035_v27 = vmul.f32 %v1028_v26, %v893_v11 }
 0x4d6   : > { %1009 = vrot.lane.b32.xlu2 %v1001_v2, %s1308_s10  ;;  %1042 = vrot.lane.b32.xlu1 %v1035_v27, %s1309_s11  ;;  %s1728_s10 = scalar_lea.vmem %s1780_s0, %s1186_s5 }
 0x4d7   : > { %v1052_v40 = vld [vmem:[%s1728_s10] sm:$0xff]  ;;  %v1053_v12 = vld [vmem:[%s1728_s10 + $0x8] sm:$0xff] }
 0x4db   : > { %v1030_v28 = vpop.permute.xlu1 %1029  ;;  %v881_v15 = vpop.permute.xlu0 %880 }
 0x4dc   : > { %v1036_v29 = vmul.f32 %v1030_v28, %v894_v16  ;;  %v889_v33 = vadd.f32 %v881_v15, %v854_v17  ;;  %v1054_v17 = vld [vmem:[%s1728_s10 + $0x10] sm:$0xff] }
 0x4de   : > { %1044 = vrot.lane.b32.xlu2 %v1036_v29, %s1309_s11  ;;  %v909_v35 = vadd.f32 %v906_v13, %v889_v33  ;;  %s1185_s11 = smul.u32 24, %s203_s28 }
 0x4e0   : > { %s1733_s12 = scalar_lea.vmem [#allocation3], %s1185_s11 }
 0x4e1   : > { %s1075_s20 = sshll.u32 %s1733_s12, 4  ;;  %s1076_s20 = int_to_ptr.vmem [resolvable:$true] %s1075_s20 }
 0x4e3   : > { %v936_v30 = vpop.permute.xlu0 %935 }
 0x4e4   : > { %v944_v36 = vadd.f32 %v936_v30, %v909_v35 }
 0x4eb   : > { %v971_v31 = vpop.permute.xlu0 %970 }
 0x4ec   : > { %v979_v37 = vadd.f32 %v971_v31, %v944_v36 }
 0x4f3   : > { %v1006_v59 = vpop.permute.xlu0 %1005 }
 0x4f4   : > { %v1014_v38 = vadd.f32 %v1006_v59, %v979_v37 }
 0x4fb   : > { %v1041_v39 = vpop.permute.xlu0 %1040 }
 0x4fc   : > { %v1049_v41 = vadd.f32 %v1041_v39, %v1014_v38 }
 0x4fe   : > { %v1055_v42 = vmul.f32 %v1052_v40, %v1049_v41 }
 0x500   : > { %1059 = vst.msk [vmem:[%s1733_s12] sm:$0xff] %vm1058_vm3, %v1055_v42 }
 0x518   : > { %v885_v34 = vpop.permute.xlu2 %884 }
 0x519   : > { %v891_v63 = vadd.f32 %v885_v34, %v856_v53 }
 0x51b   : > { %v911_v32 = vadd.f32 %v908_v56, %v891_v63 }
 0x520   : > { %v940_v44 = vpop.permute.xlu2 %939 }
 0x521   : > { %v946_v62 = vadd.f32 %v940_v44, %v911_v32 }
 0x528   : > { %v975_v48 = vpop.permute.xlu2 %974  ;;  %v883_v49 = vpop.permute.xlu1 %882 }
 0x529   : > { %v890_v51 = vadd.f32 %v883_v49, %v1705_v5  ;;  %v981_v1 = vadd.f32 %v975_v48, %v946_v62 }
 0x52b   : > { %v910_v55 = vadd.f32 %v907_v52, %v890_v51 }
 0x530   : > { %v1010_v58 = vpop.permute.xlu2 %1009  ;;  %v938_v61 = vpop.permute.xlu1 %937 }
 0x531   : > { %v1016_v3 = vadd.f32 %v1010_v58, %v981_v1  ;;  %v945_v7 = vadd.f32 %v938_v61, %v910_v55 }
 0x538   : > { %v1045_v50 = vpop.permute.xlu2 %1044  ;;  %v973_v5 = vpop.permute.xlu1 %972 }
 0x539   : > { %v1051_v4 = vadd.f32 %v1045_v50, %v1016_v3  ;;  %v980_v9 = vadd.f32 %v973_v5, %v945_v7 }
 0x53b   : > { %v1057_v6 = vmul.f32 %v1054_v17, %v1051_v4 }
 0x53d   : > { %1061 = vst.msk [vmem:[%s1733_s12 + $0x10] sm:$0xff] %vm1058_vm3, %v1057_v6 }
 0x540   : > { %v1008_v8 = vpop.permute.xlu1 %1007 }
 0x541   : > { %v1015_v10 = vadd.f32 %v1008_v8, %v980_v9 }
 0x548   : > { %v1043_v11 = vpop.permute.xlu1 %1042 }
 0x549   : > { %v1050_v14 = vadd.f32 %v1043_v11, %v1015_v10 }
 0x54b   : > { %v1056_v16 = vmul.f32 %v1053_v12, %v1050_v14 }
 0x54d   : > { %1060 = vst.msk [vmem:[%s1733_s12 + $0x8] sm:$0xff] %vm1058_vm3, %v1056_v16 }
 0x54e   : > { %1264 = shalt.err (!%p1261_p3)
}
 0x54f   : > { %s1310_s28 = smov 128  }
 0x550   : > { %1188 = dma.vmem_to_hbm [thread:$0]  (%p1374_p5), %s1076_s20, 384, %s1078_s23, %s1063_s19, %s1310_s28, %s1310_s28, %s1302_s9  }
 0x551 PF: > { %p1194_p4 = scmp.ge.s32.totalorder %s1299_s18, 2  ;;  %s1092_s11 = sand.u32 1, %s1287_s15  }
 0x552   : > { %s1093_s12 = scalar_lea.sflag [#allocation4], %s1092_s11 }
 0x553   : > { %p1191_p7 = pnand %p1194_p4, %p1378_p6 }
 0x555   : > { %p1192_p8 = pneg %p1191_p7 }
 0x557   : > { %1282 = dma.done.wait (%p1192_p8), %s1093_s12, 384  }
 0x558   : > { %1284 = vsyncadd (%p1192_p8), %s1093_s12, 4294966912  ;;  %p14_p9 = scmp.ge.s32.totalorder %s1361_s21, 4   ;;  %s1787_s15 = smov %s1291_s16 }
 0x559   : > { %s1788_s16 = smov %s1295_s17  ;;  %s1789_s17 = smov %s1372_s24 }
 0x55a   : > { %s1790_s18 = smov %s1361_s21  ;;  %16 = sbr.rel (!%p14_p9) target bundleno = 3 (0x3), region = 98 }
 0x55f   :  { %1099 = vsyncpa [#allocation4], 1 }
 0x560   :  { %1101 = vsyncpa [#allocation4 + $0x1], 1 }

</bundles_post_ra>
